<compile_context>
chip_gen: v7x
topology: tpu7x:2x2x1
jax: 0.10.0
libtpu: 0.0.40
codegen_flags: <defaults>
</compile_context>

<pallas_src>
import functools

import jax
import jax.numpy as jnp
from jax.experimental import pallas as pl
from jax.experimental.pallas import tpu as pltpu

_LANE = 128
_SUBLANE = 8
# ~4 MiB per f32 input block: 8192 rows * 128 lanes * 4 B.
_MAX_BLOCK_ROWS = 8192
# sigmoid(_PAD_LOGIT) == 0 exactly in f32, so padded pred elements add nothing.
_PAD_LOGIT = -1e30


def _round_up(x, m):
    return ((x + m - 1) // m) * m


def _dice_sums_kernel(pred_ref, gt_ref, inter_ref, union_ref):
    """Accumulate lane-wide intersection / union partial sums per batch row.

    Block shapes: pred/gt (1, R, 128); outputs (1, 1, 128), resident across
    the reduction axis k (their block index only depends on the batch axis).
    """
    k = pl.program_id(1)

    @pl.when(k == 0)
    def _():
        inter_ref[...] = jnp.zeros_like(inter_ref)
        union_ref[...] = jnp.zeros_like(union_ref)

    p = jax.nn.sigmoid(pred_ref[...].astype(jnp.float32))  # (1, R, 128)
    g = gt_ref[...].astype(jnp.float32)                    # (1, R, 128)

    # One reduction over the sublane/row axis per quantity; the final 128-wide
    # cross-lane reduce happens once in JAX outside the kernel.
    inter_ref[...] += jnp.sum(p * g, axis=1, keepdims=True)
    union_ref[...] += jnp.sum(p + g, axis=1, keepdims=True)


@functools.partial(jax.jit, static_argnames=("smooth",))
def soft_dice_loss(y_pr, y_gt, smooth=1e-05):
    """1 - diceCoeff(sigmoid(y_pr), y_gt), matching the PyTorch module."""
    N = y_pr.shape[0]
    pred_flat = y_pr.reshape(N, -1)
    gt_flat = y_gt.reshape(N, -1)
    D = pred_flat.shape[1]

    # ---- derive a VMEM-budgeted, (8,128)-aligned tiling of the feature axis.
    rows = pl.cdiv(D, _LANE)                       # feature axis as (rows, 128)
    nk = max(1, pl.cdiv(rows, _MAX_BLOCK_ROWS))    # reduction steps per batch
    block_rows = _round_up(pl.cdiv(rows, nk), _SUBLANE)
    rows_pad = nk * block_rows
    d_pad = rows_pad * _LANE

    if d_pad != D:
        pred_flat = jnp.pad(pred_flat, ((0, 0), (0, d_pad - D)),
                            constant_values=_PAD_LOGIT)
        gt_flat = jnp.pad(gt_flat, ((0, 0), (0, d_pad - D)),
                          constant_values=0)

    pred3 = pred_flat.reshape(N, rows_pad, _LANE)
    gt3 = gt_flat.reshape(N, rows_pad, _LANE)
    # NOTE: if y_gt is a 0/1 mask and y_pr comes in bf16 upstream, passing
    # them through as bf16 halves HBM traffic; kept in caller dtype here for
    # exact parity with the f32 reference.

    in_bytes = (pred3.size * pred3.dtype.itemsize
                + gt3.size * gt3.dtype.itemsize)
    cost = pl.CostEstimate(
        flops=4 * N * d_pad,
        transcendentals=N * d_pad,
        bytes_accessed=in_bytes + 2 * N * _LANE * 4,
    )

    inter_lanes, union_lanes = pl.pallas_call(
        _dice_sums_kernel,
        out_shape=(
            jax.ShapeDtypeStruct((N, 1, _LANE), jnp.float32),
            jax.ShapeDtypeStruct((N, 1, _LANE), jnp.float32),
        ),
        grid_spec=pltpu.PrefetchScalarGridSpec(
            num_scalar_prefetch=0,
            grid=(N, nk),
            in_specs=[
                pl.BlockSpec((1, block_rows, _LANE), lambda b, k: (b, k, 0)),
                pl.BlockSpec((1, block_rows, _LANE), lambda b, k: (b, k, 0)),
            ],
            out_specs=[
                pl.BlockSpec((1, 1, _LANE), lambda b, k: (b, 0, 0)),
                pl.BlockSpec((1, 1, _LANE), lambda b, k: (b, 0, 0)),
            ],
        ),
        compiler_params=pltpu.CompilerParams(
            dimension_semantics=("parallel", "arbitrary"),
            vmem_limit_bytes=32 * 1024 * 1024,
        ),
        cost_estimate=cost,
    )(pred3, gt3)

    inter = jnp.sum(inter_lanes[:, 0, :], axis=-1)   # (N,)
    union = jnp.sum(union_lanes[:, 0, :], axis=-1)   # (N,)
    dice_per_batch = (2.0 * inter + smooth) / (union + smooth)
    dice = jnp.sum(dice_per_batch) / N
    return 1.0 - dice


def _reference(y_pr, y_gt, smooth=1e-05):
    N = y_pr.shape[0]
    p = jax.nn.sigmoid(y_pr.astype(jnp.float32)).reshape(N, -1)
    g = y_gt.astype(jnp.float32).reshape(N, -1)
    inter = jnp.sum(p * g, axis=1)
    union = jnp.sum(p, axis=1) + jnp.sum(g, axis=1)
    return 1.0 - jnp.sum((2.0 * inter + smooth) / (union + smooth)) / N


if __name__ == "__main__":
    key = jax.random.PRNGKey(0)
    k1, k2, k3, k4 = jax.random.split(key, 4)

    # Primary case: NCHW logits + binary mask, matching the PyTorch module.
    y_pr = jax.random.normal(k1, (2, 4, 16, 16), dtype=jnp.float32)
    y_gt = (jax.random.uniform(k2, (2, 4, 16, 16)) > 0.5).astype(jnp.float32)
    loss = soft_dice_loss(y_pr, y_gt)
    jax.block_until_ready(loss)
    ref = _reference(y_pr, y_gt)
    assert jnp.allclose(loss, ref, atol=1e-5, rtol=1e-5), (loss, ref)

    # Misaligned feature size exercises the padding path (D = 3*17*19 = 969).
    y_pr2 = jax.random.normal(k3, (2, 3, 17, 19), dtype=jnp.float32)
    y_gt2 = (jax.random.uniform(k4, (2, 3, 17, 19)) > 0.5).astype(jnp.float32)
    loss2 = soft_dice_loss(y_pr2, y_gt2)
    jax.block_until_ready(loss2)
    ref2 = _reference(y_pr2, y_gt2)
    assert jnp.allclose(loss2, ref2, atol=1e-5, rtol=1e-5), (loss2, ref2)

    print("KERNEL_OK")
</pallas_src>

<mosaic_0001>
module attributes {stable_mosaic.version = 11 : i64} {
  func.func @_dice_sums_kernel(%arg0: i32, %arg1: i32, %arg2: memref<1x8x128xf32, #tpu.memory_space<vmem>>, %arg3: memref<1x8x128xf32, #tpu.memory_space<vmem>>, %arg4: memref<1x1x128xf32, #tpu.memory_space<vmem>>, %arg5: memref<1x1x128xf32, #tpu.memory_space<vmem>>) attributes {dimension_semantics = [#tpu.dimension_semantics<parallel>, #tpu.dimension_semantics<arbitrary>], iteration_bounds = array<i64: 2, 1>, scalar_prefetch = 0 : i64, scratch_operands = 0 : i64, tpu.core_type = #tpu.core_type<tc>, window_params = [{transform_indices = @transform_0, window_bounds = array<i64: 1, 8, 128>}, {transform_indices = @transform_1, window_bounds = array<i64: 1, 8, 128>}, {transform_indices = @transform_2, window_bounds = array<i64: 1, 1, 128>}, {transform_indices = @transform_3, window_bounds = array<i64: 1, 1, 128>}]} {
    %c0_i32 = arith.constant 0 : i32
    %0 = arith.cmpi eq, %arg1, %c0_i32 : i32
    %1 = arith.extui %0 : i1 to i32
    %c0_i32_0 = arith.constant 0 : i32
    %2 = arith.cmpi ne, %1, %c0_i32_0 : i32
    scf.if %2 {
      %cst_20 = arith.constant 0.000000e+00 : f32
      %22 = vector.broadcast %cst_20 : f32 to vector<1x1x128xf32>
      %c0_21 = arith.constant 0 : index
      %c0_22 = arith.constant 0 : index
      %c0_23 = arith.constant 0 : index
      %23 = vector.load %arg4[%c0_21, %c0_22, %c0_23] : memref<1x1x128xf32, #tpu.memory_space<vmem>>, vector<1x1x128xf32>
      tpu.vector_store %arg4[%c0_21, %c0_22, %c0_23], %22 {strides = array<i32>} : memref<1x1x128xf32, #tpu.memory_space<vmem>>, vector<1x1x128xf32>,
      %cst_24 = arith.constant 0.000000e+00 : f32
      %24 = vector.broadcast %cst_24 : f32 to vector<1x1x128xf32>
      %c0_25 = arith.constant 0 : index
      %c0_26 = arith.constant 0 : index
      %c0_27 = arith.constant 0 : index
      %25 = vector.load %arg5[%c0_25, %c0_26, %c0_27] : memref<1x1x128xf32, #tpu.memory_space<vmem>>, vector<1x1x128xf32>
      tpu.vector_store %arg5[%c0_25, %c0_26, %c0_27], %24 {strides = array<i32>} : memref<1x1x128xf32, #tpu.memory_space<vmem>>, vector<1x1x128xf32>,
    } else {
    }
    %c0 = arith.constant 0 : index
    %c0_1 = arith.constant 0 : index
    %c0_2 = arith.constant 0 : index
    %3 = vector.load %arg2[%c0, %c0_1, %c0_2] : memref<1x8x128xf32, #tpu.memory_space<vmem>>, vector<1x8x128xf32>
    %4 = arith.negf %3 : vector<1x8x128xf32>
    %5 = math.exp %4 : vector<1x8x128xf32>
    %cst = arith.constant 1.000000e+00 : f32
    %6 = vector.broadcast %cst : f32 to vector<1x8x128xf32>
    %7 = arith.addf %6, %5 : vector<1x8x128xf32>
    %8 = arith.divf %6, %7 : vector<1x8x128xf32>
    %c0_3 = arith.constant 0 : index
    %c0_4 = arith.constant 0 : index
    %c0_5 = arith.constant 0 : index
    %9 = vector.load %arg3[%c0_3, %c0_4, %c0_5] : memref<1x8x128xf32, #tpu.memory_space<vmem>>, vector<1x8x128xf32>
    %c0_6 = arith.constant 0 : index
    %c0_7 = arith.constant 0 : index
    %c0_8 = arith.constant 0 : index
    %10 = vector.load %arg4[%c0_6, %c0_7, %c0_8] : memref<1x1x128xf32, #tpu.memory_space<vmem>>, vector<1x1x128xf32>
    %11 = arith.mulf %8, %9 : vector<1x8x128xf32>
    %cst_9 = arith.constant dense<0.000000e+00> : vector<1x128xf32>
    %12 = vector.multi_reduction <add>, %11, %cst_9 [1] : vector<1x8x128xf32> to vector<1x128xf32>
    %13 = vector.shape_cast %12 : vector<1x128xf32> to vector<1x1x128xf32>
    %14 = arith.addf %10, %13 : vector<1x1x128xf32>
    %c0_10 = arith.constant 0 : index
    %c0_11 = arith.constant 0 : index
    %c0_12 = arith.constant 0 : index
    %15 = vector.load %arg4[%c0_10, %c0_11, %c0_12] : memref<1x1x128xf32, #tpu.memory_space<vmem>>, vector<1x1x128xf32>
    tpu.vector_store %arg4[%c0_10, %c0_11, %c0_12], %14 {strides = array<i32>} : memref<1x1x128xf32, #tpu.memory_space<vmem>>, vector<1x1x128xf32>,
    %c0_13 = arith.constant 0 : index
    %c0_14 = arith.constant 0 : index
    %c0_15 = arith.constant 0 : index
    %16 = vector.load %arg5[%c0_13, %c0_14, %c0_15] : memref<1x1x128xf32, #tpu.memory_space<vmem>>, vector<1x1x128xf32>
    %17 = arith.addf %8, %9 : vector<1x8x128xf32>
    %cst_16 = arith.constant dense<0.000000e+00> : vector<1x128xf32>
    %18 = vector.multi_reduction <add>, %17, %cst_16 [1] : vector<1x8x128xf32> to vector<1x128xf32>
    %19 = vector.shape_cast %18 : vector<1x128xf32> to vector<1x1x128xf32>
    %20 = arith.addf %16, %19 : vector<1x1x128xf32>
    %c0_17 = arith.constant 0 : index
    %c0_18 = arith.constant 0 : index
    %c0_19 = arith.constant 0 : index
    %21 = vector.load %arg5[%c0_17, %c0_18, %c0_19] : memref<1x1x128xf32, #tpu.memory_space<vmem>>, vector<1x1x128xf32>
    tpu.vector_store %arg5[%c0_17, %c0_18, %c0_19], %20 {strides = array<i32>} : memref<1x1x128xf32, #tpu.memory_space<vmem>>, vector<1x1x128xf32>,
    return
  }
  func.func @transform_0(%arg0: i32, %arg1: i32) -> (i32, i32, i32) {
    %c0_i32 = arith.constant 0 : i32
    %c0_i32_0 = arith.constant 0 : i32
    return %arg0, %arg1, %c0_i32 : i32, i32, i32
  }
  func.func @transform_1(%arg0: i32, %arg1: i32) -> (i32, i32, i32) {
    %c0_i32 = arith.constant 0 : i32
    %c0_i32_0 = arith.constant 0 : i32
    return %arg0, %arg1, %c0_i32 : i32, i32, i32
  }
  func.func @transform_2(%arg0: i32, %arg1: i32) -> (i32, i32, i32) {
    %c0_i32 = arith.constant 0 : i32
    %c0_i32_0 = arith.constant 0 : i32
    %c0_i32_1 = arith.constant 0 : i32
    return %arg0, %c0_i32, %c0_i32_0 : i32, i32, i32
  }
  func.func @transform_3(%arg0: i32, %arg1: i32) -> (i32, i32, i32) {
    %c0_i32 = arith.constant 0 : i32
    %c0_i32_0 = arith.constant 0 : i32
    %c0_i32_1 = arith.constant 0 : i32
    return %arg0, %c0_i32, %c0_i32_0 : i32, i32, i32
  }
}

</mosaic_0001>

<bundles_post_ra>
// kernel: soft_dice_loss.1
= control target key start
LH: loop header
LB: loop body
LE: loop exit
PB: predicated region body
PF: predicated region fallthrough
CT: control target
= control target key end

     0   :  { %s440_s12 = smov 0   ;;  %s442_s13 = smov 0   ;;  %s484_s0 = inlined_call_operand.vmem [shape: f32[2,8,128], index: 0, kind: input, shape index: {}]   ;;  %s485_s1 = inlined_call_operand.vmem [shape: f32[2,8,128], index: 1, kind: input, shape index: {}]   ;;  %s486_s2 = inlined_call_operand.vmem [shape: f32[2,1,128], index: 2, kind: output, shape index: {0}]   ;;  %s487_s3 = inlined_call_operand.vmem [shape: f32[2,1,128], index: 3, kind: output, shape index: {1}]  }
   0x1   :  { %s444_s14 = smov 0  }
   0x2 LB: > { %s26_s15 = sadd.s32 1, %s413_s13  ;;  %p360_p0 = scmp.ge.s32.totalorder %s417_s14, 1  ;;  %s417_s14 = sphi %s444_s14, %s14_s14   ;;  %s413_s13 = sphi %s442_s13, %s489_s13   ;;  %s409_s12 = sphi %s440_s12, %s488_s12  }
   0x3   : > { %p28_p1 = scmp.ge.s32.totalorder %s26_s15, 2  ;;  %p170_p2 = scmp.lt.s32.totalorder %s417_s14, 3 }
   0x5   : > { %s491_s15 = smov (%p28_p1, %s26_s15), 0  ;;  %p171_p3 = pnand %p360_p0, %p170_p2 }
   0x6   : > { %p204_p4 = scmp.lt.s32.totalorder (!%p171_p3), %s409_s12, 1  ;;  %v419_v0 = vmov (!%p171_p3), 0.0  }
   0x7   : > { %174 = sbr.rel (%p171_p3) target bundleno = 61 (0x3d), region = 28 }
   0xe   : > { %s493_s12 = smov (!%p204_p4, %s409_s12), 1 }
   0xf   : > { %s361_s16 = sshll.u32 %s493_s12, 3  ;;  %s461_s19 = scalar_lea.vmem %s486_s2, %s493_s12 }
  0x10   : > { %s210_s22 = scalar_lea.vmem %s484_s0, %s361_s16  ;;  %228 = vst [vmem:[%s461_s19] sm:$0x1] %v419_v0  ;;  %s223_s25 = scalar_lea.vmem %s487_s3, %s493_s12 }
  0x11   : > { %v230_v1 = vld [vmem:[%s210_s22] sm:$0xff]  ;;  %229 = vst [vmem:[%s223_s25] sm:$0x1] %v419_v0  ;;  %s217_s28 = scalar_lea.vmem %s485_s1, %s361_s16 }
  0x12   : > { %v363_v2 = vmul.f32 -1.442695, %v230_v1  ;;  %v237_v5 = vld [vmem:[%s217_s28] sm:$0xff] }
  0x14   : > { %391 = vpow2.f32 %v363_v2 }
  0x17   : > { %v238_v19 = vld [vmem:[%s461_s19] sm:$0x1] }
  0x18   : > { %v248_v20 = vld [vmem:[%s223_s25] sm:$0x1] }
  0x1e   : > { %v392_v3 = vpop.eup %391 }
  0x1f   : > { %v234_v4 = vadd.f32 1.0, %v392_v3 }
  0x21   : > { %393 = vrcp.f32 %v234_v4 }
  0x2b   : > { %v394_v6 = vpop.eup %393 }
  0x2c   : > { %v239_v7 = vmul.f32 %v394_v6, %v237_v5  ;;  %v249_v8 = vadd.f32 %v394_v6, %v237_v5 }
  0x2e   : > { %v240_v9 = vrot.slane %v239_v7, 4  ;;  %v250_v10 = vrot.slane %v249_v8, 4 }
  0x30   : > { %v241_v11 = vadd.f32 %v240_v9, %v239_v7  ;;  %v251_v12 = vadd.f32 %v250_v10, %v249_v8 }
  0x32   : > { %v242_v13 = vrot.slane %v241_v11, 2  ;;  %v252_v14 = vrot.slane %v251_v12, 2 }
  0x34   : > { %v243_v15 = vadd.f32 %v242_v13, %v241_v11  ;;  %v253_v16 = vadd.f32 %v252_v14, %v251_v12 }
  0x36   : > { %v244_v17 = vrot.slane %v243_v15, 1  ;;  %v254_v18 = vrot.slane %v253_v16, 1 }
  0x38   : > { %v245_v21 = vadd.f32 %v244_v17, %v243_v15  ;;  %v255_v22 = vadd.f32 %v254_v18, %v253_v16 }
  0x3a   : > { %v246_v23 = vadd.f32 %v245_v21, %v238_v19  ;;  %v256_v24 = vadd.f32 %v255_v22, %v248_v20 }
  0x3c   : > { %247 = vst [vmem:[%s461_s19] sm:$0x1] %v246_v23  ;;  %257 = vst [vmem:[%s223_s25] sm:$0x1] %v256_v24 }
  0x3d PF: > { %s14_s14 = sadd.s32 1, %s417_s14   ;;  %s488_s12 = smov %s413_s13 }
  0x3e   : > { %p11_p5 = scmp.ge.s32.totalorder %s14_s14, 4   ;;  %s489_s13 = smov %s491_s15 }
  0x40   :  { %13 = sbr.rel (!%p11_p5) target bundleno = 2 (0x2), region = 77 }

</bundles_post_ra>
